<compile_context>
chip_gen: v7x
topology: tpu7x:2x2x1
jax: 0.10.0
libtpu: 0.0.40
codegen_flags: <defaults>
</compile_context>

<pallas_src>
import jax
import jax.numpy as jnp
from jax.experimental import pallas as pl
from jax.experimental.pallas import tpu as pltpu

LOG_STD_MIN = -20.0
LOG_STD_MAX = 2.0


def _round_up(x: int, m: int) -> int:
    return ((x + m - 1) // m) * m


def _cdiv(a: int, b: int) -> int:
    return -(-a // b)


def _actor_kernel(x_ref, w1_ref, b1_ref, w2_ref, b2_ref, wh_ref, bh_ref,
                  lo_ref, hi_ref, out_ref):
    # MXU operand dtype is whatever the weights were prepared in (f32 or bf16);
    # accumulation and all VPU work stay f32.
    mxu_dtype = w1_ref.dtype

    x = x_ref[...].astype(mxu_dtype)
    # fc1 + ReLU
    h = jnp.dot(x, w1_ref[...], preferred_element_type=jnp.float32)
    h = jnp.maximum(h + b1_ref[...], 0.0)
    # fc2 + ReLU
    h = jnp.dot(h.astype(mxu_dtype), w2_ref[...],
                preferred_element_type=jnp.float32)
    h = jnp.maximum(h + b2_ref[...], 0.0)
    # fused heads: one matmul producing [mean | log_std] columns.
    heads = jnp.dot(h.astype(mxu_dtype), wh_ref[...],
                    preferred_element_type=jnp.float32)
    heads = heads + bh_ref[...]
    # Column-wise clamp via resident lo/hi rows: +-inf on the mean columns
    # (identity), [-20, 2] on the log_std columns.
    heads = jnp.minimum(jnp.maximum(heads, lo_ref[...]), hi_ref[...])
    out_ref[...] = heads.astype(out_ref.dtype)


def prepare_actor_params(params, *, use_bf16: bool = False,
                         pad_heads_to: int | None = None):
    """One-time weight prep: transpose to (in, out), fuse the two heads,
    build the column-clamp rows, and optionally cast weights to bf16 /
    lane-pad the fused head."""
    out_dim = int(params["mean_w"].shape[0])
    n_fused = 2 * out_dim
    n_cols = n_fused if pad_heads_to is None else _round_up(n_fused, pad_heads_to)
    w_dtype = jnp.bfloat16 if use_bf16 else jnp.float32

    w1 = jnp.asarray(params["fc1_w"], jnp.float32).T.astype(w_dtype)   # (in, hidden)
    b1 = jnp.asarray(params["fc1_b"], jnp.float32)[None, :]            # (1, hidden)
    w2 = jnp.asarray(params["fc2_w"], jnp.float32).T.astype(w_dtype)   # (hidden, hidden)
    b2 = jnp.asarray(params["fc2_b"], jnp.float32)[None, :]            # (1, hidden)

    wh = jnp.concatenate(
        [jnp.asarray(params["mean_w"], jnp.float32).T,
         jnp.asarray(params["log_std_w"], jnp.float32).T], axis=1)     # (hidden, 2*out)
    bh = jnp.concatenate(
        [jnp.asarray(params["mean_b"], jnp.float32),
         jnp.asarray(params["log_std_b"], jnp.float32)])[None, :]      # (1, 2*out)
    pad = n_cols - n_fused
    if pad:
        wh = jnp.pad(wh, ((0, 0), (0, pad)))
        bh = jnp.pad(bh, ((0, 0), (0, pad)))
    wh = wh.astype(w_dtype)

    lo = jnp.full((1, n_cols), -jnp.inf, jnp.float32)
    hi = jnp.full((1, n_cols), jnp.inf, jnp.float32)
    lo = lo.at[0, out_dim:n_fused].set(LOG_STD_MIN)
    hi = hi.at[0, out_dim:n_fused].set(LOG_STD_MAX)

    return {"w1": w1, "b1": b1, "w2": w2, "b2": b2,
            "wh": wh, "bh": bh, "lo": lo, "hi": hi, "out_dim": out_dim}


def actor_forward(x, prep, *, tile_b: int = 512):
    """x: (B, input_dim) float32. prep: output of prepare_actor_params.
    Returns (mean, log_std), each (B, out_dim) float32."""
    B, in_dim = x.shape
    out_dim = prep["out_dim"]
    hidden = prep["w1"].shape[1]
    n_cols = prep["wh"].shape[1]

    # ---- batch tiling ------------------------------------------------------
    tile_b = max(8, _round_up(int(tile_b), 8))
    b_pad = _round_up(B, 8)
    if b_pad <= tile_b:
        # Tiny / single-tile case: run the whole batch in one grid step.
        tile_b = b_pad
    else:
        # Rebalance so all grid steps carry ~equal rows (>= 2 steps; on v7x
        # the ("parallel",) batch axis then shards across both TensorCores).
        n_steps = _cdiv(b_pad, tile_b)
        tile_b = _round_up(_cdiv(b_pad, n_steps), 8)
    b_pad = _round_up(B, tile_b)
    assert tile_b % 8 == 0 and b_pad % tile_b == 0
    if b_pad != B:
        x = jnp.pad(x, ((0, b_pad - B), (0, 0)))
    grid = (b_pad // tile_b,)

    # ---- cost / VMEM bookkeeping -------------------------------------------
    flops = 2 * b_pad * (in_dim * hidden + hidden * hidden + hidden * n_cols)
    w_itemsize = jnp.dtype(prep["w1"].dtype).itemsize
    weight_bytes = w_itemsize * (in_dim * hidden + hidden * hidden + hidden * n_cols)
    small_bytes = 4 * (2 * hidden + 3 * n_cols)
    io_bytes = 4 * b_pad * (in_dim + n_cols)
    bytes_accessed = io_bytes + weight_bytes + small_bytes

    # Estimate VMEM (double-buffered inputs/outputs; resident weights are also
    # double-buffered by default — single-buffering them via pl.Buffered(1) is
    # only worth it if hidden_dim is scaled far beyond 256).
    tile_io_bytes = 4 * tile_b * (in_dim + n_cols)
    act_bytes = 4 * tile_b * hidden
    vmem_est = 2 * (weight_bytes + small_bytes + tile_io_bytes) + 3 * act_bytes
    compiler_kwargs = dict(dimension_semantics=("parallel",))
    if vmem_est > (24 << 20):
        compiler_kwargs["vmem_limit_bytes"] = min(int(vmem_est * 1.5), 120 << 20)

    resident = lambda a: pl.BlockSpec(a.shape, lambda i: (0,) * a.ndim)

    out = pl.pallas_call(
        _actor_kernel,
        out_shape=jax.ShapeDtypeStruct((b_pad, n_cols), jnp.float32),
        grid=grid,
        in_specs=[
            pl.BlockSpec((tile_b, in_dim), lambda i: (i, 0)),   # x: batch-tiled
            resident(prep["w1"]), resident(prep["b1"]),
            resident(prep["w2"]), resident(prep["b2"]),
            resident(prep["wh"]), resident(prep["bh"]),
            resident(prep["lo"]), resident(prep["hi"]),
        ],
        out_specs=pl.BlockSpec((tile_b, n_cols), lambda i: (i, 0)),
        compiler_params=pltpu.CompilerParams(**compiler_kwargs),
        cost_estimate=pl.CostEstimate(
            flops=flops, transcendentals=0, bytes_accessed=bytes_accessed),
    )(x, prep["w1"], prep["b1"], prep["w2"], prep["b2"],
      prep["wh"], prep["bh"], prep["lo"], prep["hi"])

    mean = out[:B, :out_dim]
    log_std = out[:B, out_dim:2 * out_dim]
    return mean, log_std


# --------------------------- reference & test --------------------------------
def init_actor_params(key, input_dim, output_dim, hidden_dim=256):
    ks = jax.random.split(key, 8)

    def lin(kw, kb, fan_in, fan_out):
        bound = 1.0 / jnp.sqrt(fan_in)
        w = jax.random.uniform(kw, (fan_out, fan_in), jnp.float32, -bound, bound)
        b = jax.random.uniform(kb, (fan_out,), jnp.float32, -bound, bound)
        return w, b

    fc1_w, fc1_b = lin(ks[0], ks[1], input_dim, hidden_dim)
    fc2_w, fc2_b = lin(ks[2], ks[3], hidden_dim, hidden_dim)
    mean_w, mean_b = lin(ks[4], ks[5], hidden_dim, output_dim)
    ls_w, ls_b = lin(ks[6], ks[7], hidden_dim, output_dim)
    return dict(fc1_w=fc1_w, fc1_b=fc1_b, fc2_w=fc2_w, fc2_b=fc2_b,
                mean_w=mean_w, mean_b=mean_b, log_std_w=ls_w, log_std_b=ls_b)


def actor_ref(x, p):
    h = jnp.maximum(x @ p["fc1_w"].T + p["fc1_b"], 0.0)
    h = jnp.maximum(h @ p["fc2_w"].T + p["fc2_b"], 0.0)
    mean = h @ p["mean_w"].T + p["mean_b"]
    log_std = jnp.clip(h @ p["log_std_w"].T + p["log_std_b"],
                       LOG_STD_MIN, LOG_STD_MAX)
    return mean, log_std


if __name__ == "__main__":
    key = jax.random.PRNGKey(0)
    k_param, k_x = jax.random.split(key)

    batch, input_dim, output_dim, hidden_dim = 200, 16, 8, 32
    params = init_actor_params(k_param, input_dim, output_dim, hidden_dim)
    x = jax.random.normal(k_x, (batch, input_dim), jnp.float32)

    mean_ref, log_std_ref = actor_ref(x, params)

    # 1) Default f32 path, single-step grid (whole batch in one tile).
    prep = prepare_actor_params(params)
    mean, log_std = actor_forward(x, prep)
    jax.block_until_ready((mean, log_std))
    assert mean.shape == mean_ref.shape and log_std.shape == log_std_ref.shape
    assert jnp.allclose(mean, mean_ref, atol=1e-5, rtol=1e-5)
    assert jnp.allclose(log_std, log_std_ref, atol=1e-5, rtol=1e-5)

    # 2) Multi-step grid (exercises batch tiling / padding path).
    mean_t, log_std_t = actor_forward(x, prep, tile_b=64)
    jax.block_until_ready((mean_t, log_std_t))
    assert jnp.allclose(mean_t, mean_ref, atol=1e-5, rtol=1e-5)
    assert jnp.allclose(log_std_t, log_std_ref, atol=1e-5, rtol=1e-5)

    # 3) Optional bf16-MXU path (looser tolerance: bf16 weights, f32 accumulate).
    prep_bf16 = prepare_actor_params(params, use_bf16=True)
    mean_b, log_std_b = actor_forward(x, prep_bf16)
    jax.block_until_ready((mean_b, log_std_b))
    assert jnp.allclose(mean_b, mean_ref, atol=2e-1, rtol=2e-1)
    assert jnp.allclose(log_std_b, log_std_ref, atol=2e-1, rtol=2e-1)

    print("KERNEL_OK")
</pallas_src>

<mosaic_0001>
module attributes {stable_mosaic.version = 11 : i64} {
  func.func @_actor_kernel(%arg0: i32, %arg1: memref<200x16xf32, #tpu.memory_space<vmem>>, %arg2: memref<16x32xf32, #tpu.memory_space<vmem>>, %arg3: memref<1x32xf32, #tpu.memory_space<vmem>>, %arg4: memref<32x32xf32, #tpu.memory_space<vmem>>, %arg5: memref<1x32xf32, #tpu.memory_space<vmem>>, %arg6: memref<32x16xf32, #tpu.memory_space<vmem>>, %arg7: memref<1x16xf32, #tpu.memory_space<vmem>>, %arg8: memref<1x16xf32, #tpu.memory_space<vmem>>, %arg9: memref<1x16xf32, #tpu.memory_space<vmem>>, %arg10: memref<200x16xf32, #tpu.memory_space<vmem>>) attributes {dimension_semantics = [#tpu.dimension_semantics<parallel>], iteration_bounds = array<i64: 1>, scalar_prefetch = 0 : i64, scratch_operands = 0 : i64, tpu.core_type = #tpu.core_type<tc>, window_params = [{transform_indices = @transform_0, window_bounds = array<i64: 200, 16>}, {pipeline_mode = #tpu.pipeline_mode<synchronous>, transform_indices = @transform_1, window_bounds = array<i64: 16, 32>}, {pipeline_mode = #tpu.pipeline_mode<synchronous>, transform_indices = @transform_2, window_bounds = array<i64: 1, 32>}, {pipeline_mode = #tpu.pipeline_mode<synchronous>, transform_indices = @transform_3, window_bounds = array<i64: 32, 32>}, {pipeline_mode = #tpu.pipeline_mode<synchronous>, transform_indices = @transform_4, window_bounds = array<i64: 1, 32>}, {pipeline_mode = #tpu.pipeline_mode<synchronous>, transform_indices = @transform_5, window_bounds = array<i64: 32, 16>}, {pipeline_mode = #tpu.pipeline_mode<synchronous>, transform_indices = @transform_6, window_bounds = array<i64: 1, 16>}, {pipeline_mode = #tpu.pipeline_mode<synchronous>, transform_indices = @transform_7, window_bounds = array<i64: 1, 16>}, {pipeline_mode = #tpu.pipeline_mode<synchronous>, transform_indices = @transform_8, window_bounds = array<i64: 1, 16>}, {transform_indices = @transform_9, window_bounds = array<i64: 200, 16>}]} {
    %c0 = arith.constant 0 : index
    %c0_0 = arith.constant 0 : index
    %0 = vector.load %arg1[%c0, %c0_0] : memref<200x16xf32, #tpu.memory_space<vmem>>, vector<200x16xf32>
    %c0_1 = arith.constant 0 : index
    %c0_2 = arith.constant 0 : index
    %1 = vector.load %arg2[%c0_1, %c0_2] : memref<16x32xf32, #tpu.memory_space<vmem>>, vector<16x32xf32>
    %cst = arith.constant dense<0.000000e+00> : vector<200x32xf32>
    %2 = tpu.matmul %0, %1, %cst {dimension_numbers = #tpu.dot_dimension_numbers<[1], [0], [0], [1], [0, 0, 1, 1], [], []>} : vector<200x16xf32>, vector<16x32xf32>, vector<200x32xf32> -> vector<200x32xf32>
    %c0_3 = arith.constant 0 : index
    %c0_4 = arith.constant 0 : index
    %3 = vector.load %arg3[%c0_3, %c0_4] : memref<1x32xf32, #tpu.memory_space<vmem>>, vector<1x32xf32>
    %4 = vector.broadcast %3 : vector<1x32xf32> to vector<200x32xf32>
    %5 = arith.addf %2, %4 : vector<200x32xf32>
    %cst_5 = arith.constant 0.000000e+00 : f32
    %6 = vector.broadcast %cst_5 : f32 to vector<200x32xf32>
    %7 = arith.maximumf %5, %6 : vector<200x32xf32>
    %c0_6 = arith.constant 0 : index
    %c0_7 = arith.constant 0 : index
    %8 = vector.load %arg4[%c0_6, %c0_7] : memref<32x32xf32, #tpu.memory_space<vmem>>, vector<32x32xf32>
    %cst_8 = arith.constant dense<0.000000e+00> : vector<200x32xf32>
    %9 = tpu.matmul %7, %8, %cst_8 {dimension_numbers = #tpu.dot_dimension_numbers<[1], [0], [0], [1], [0, 0, 1, 1], [], []>} : vector<200x32xf32>, vector<32x32xf32>, vector<200x32xf32> -> vector<200x32xf32>
    %c0_9 = arith.constant 0 : index
    %c0_10 = arith.constant 0 : index
    %10 = vector.load %arg5[%c0_9, %c0_10] : memref<1x32xf32, #tpu.memory_space<vmem>>, vector<1x32xf32>
    %11 = vector.broadcast %10 : vector<1x32xf32> to vector<200x32xf32>
    %12 = arith.addf %9, %11 : vector<200x32xf32>
    %cst_11 = arith.constant 0.000000e+00 : f32
    %13 = vector.broadcast %cst_11 : f32 to vector<200x32xf32>
    %14 = arith.maximumf %12, %13 : vector<200x32xf32>
    %c0_12 = arith.constant 0 : index
    %c0_13 = arith.constant 0 : index
    %15 = vector.load %arg6[%c0_12, %c0_13] : memref<32x16xf32, #tpu.memory_space<vmem>>, vector<32x16xf32>
    %cst_14 = arith.constant dense<0.000000e+00> : vector<200x16xf32>
    %16 = tpu.matmul %14, %15, %cst_14 {dimension_numbers = #tpu.dot_dimension_numbers<[1], [0], [0], [1], [0, 0, 1, 1], [], []>} : vector<200x32xf32>, vector<32x16xf32>, vector<200x16xf32> -> vector<200x16xf32>
    %c0_15 = arith.constant 0 : index
    %c0_16 = arith.constant 0 : index
    %17 = vector.load %arg7[%c0_15, %c0_16] : memref<1x16xf32, #tpu.memory_space<vmem>>, vector<1x16xf32>
    %18 = vector.broadcast %17 : vector<1x16xf32> to vector<200x16xf32>
    %19 = arith.addf %16, %18 : vector<200x16xf32>
    %c0_17 = arith.constant 0 : index
    %c0_18 = arith.constant 0 : index
    %20 = vector.load %arg8[%c0_17, %c0_18] : memref<1x16xf32, #tpu.memory_space<vmem>>, vector<1x16xf32>
    %21 = vector.broadcast %20 : vector<1x16xf32> to vector<200x16xf32>
    %22 = arith.maximumf %19, %21 : vector<200x16xf32>
    %c0_19 = arith.constant 0 : index
    %c0_20 = arith.constant 0 : index
    %23 = vector.load %arg9[%c0_19, %c0_20] : memref<1x16xf32, #tpu.memory_space<vmem>>, vector<1x16xf32>
    %24 = vector.broadcast %23 : vector<1x16xf32> to vector<200x16xf32>
    %25 = arith.minimumf %22, %24 : vector<200x16xf32>
    %c0_21 = arith.constant 0 : index
    %c0_22 = arith.constant 0 : index
    %26 = vector.load %arg10[%c0_21, %c0_22] : memref<200x16xf32, #tpu.memory_space<vmem>>, vector<200x16xf32>
    tpu.vector_store %arg10[%c0_21, %c0_22], %25 {strides = array<i32>} : memref<200x16xf32, #tpu.memory_space<vmem>>, vector<200x16xf32>,
    return
  }
  func.func @transform_0(%arg0: i32) -> (i32, i32) {
    %c0_i32 = arith.constant 0 : i32
    %c0_i32_0 = arith.constant 0 : i32
    return %arg0, %c0_i32 : i32, i32
  }
  func.func @transform_1(%arg0: i32) -> (i32, i32) {
    %c0_i32 = arith.constant 0 : i32
    %c0_i32_0 = arith.constant 0 : i32
    %c0_i32_1 = arith.constant 0 : i32
    return %c0_i32, %c0_i32_0 : i32, i32
  }
  func.func @transform_2(%arg0: i32) -> (i32, i32) {
    %c0_i32 = arith.constant 0 : i32
    %c0_i32_0 = arith.constant 0 : i32
    %c0_i32_1 = arith.constant 0 : i32
    return %c0_i32, %c0_i32_0 : i32, i32
  }
  func.func @transform_3(%arg0: i32) -> (i32, i32) {
    %c0_i32 = arith.constant 0 : i32
    %c0_i32_0 = arith.constant 0 : i32
    %c0_i32_1 = arith.constant 0 : i32
    return %c0_i32, %c0_i32_0 : i32, i32
  }
  func.func @transform_4(%arg0: i32) -> (i32, i32) {
    %c0_i32 = arith.constant 0 : i32
    %c0_i32_0 = arith.constant 0 : i32
    %c0_i32_1 = arith.constant 0 : i32
    return %c0_i32, %c0_i32_0 : i32, i32
  }
  func.func @transform_5(%arg0: i32) -> (i32, i32) {
    %c0_i32 = arith.constant 0 : i32
    %c0_i32_0 = arith.constant 0 : i32
    %c0_i32_1 = arith.constant 0 : i32
    return %c0_i32, %c0_i32_0 : i32, i32
  }
  func.func @transform_6(%arg0: i32) -> (i32, i32) {
    %c0_i32 = arith.constant 0 : i32
    %c0_i32_0 = arith.constant 0 : i32
    %c0_i32_1 = arith.constant 0 : i32
    return %c0_i32, %c0_i32_0 : i32, i32
  }
  func.func @transform_7(%arg0: i32) -> (i32, i32) {
    %c0_i32 = arith.constant 0 : i32
    %c0_i32_0 = arith.constant 0 : i32
    %c0_i32_1 = arith.constant 0 : i32
    return %c0_i32, %c0_i32_0 : i32, i32
  }
  func.func @transform_8(%arg0: i32) -> (i32, i32) {
    %c0_i32 = arith.constant 0 : i32
    %c0_i32_0 = arith.constant 0 : i32
    %c0_i32_1 = arith.constant 0 : i32
    return %c0_i32, %c0_i32_0 : i32, i32
  }
  func.func @transform_9(%arg0: i32) -> (i32, i32) {
    %c0_i32 = arith.constant 0 : i32
    %c0_i32_0 = arith.constant 0 : i32
    return %arg0, %c0_i32 : i32, i32
  }
}

</mosaic_0001>

<bundles_post_ra>
// kernel: tpu_custom_call.1
= control target key start
LH: loop header
LB: loop body
LE: loop exit
PB: predicated region body
PF: predicated region fallthrough
CT: control target
= control target key end

     0   :  { %v1458_v0 = vmov 0.0|0.0   ;;  %vm1459_vm0 = vmmov 0   ;;  %v1460_v3 = vmov 0.0   ;;  %vm66_vm1 = vcmask 130048   ;;  %s2127_s1 = inlined_call_operand.vmem [shape: f32[16,32], index: 1, kind: input, shape index: {}]   ;;  %s2128_s0 = inlined_call_operand.vmem [shape: f32[200,16], index: 0, kind: input, shape index: {}]   ;;  %s2129_s3 = inlined_call_operand.vmem [shape: f32[32,32], index: 3, kind: input, shape index: {}]   ;;  %s2130_s5 = inlined_call_operand.vmem [shape: f32[32,16], index: 5, kind: input, shape index: {}]   ;;  %s2131_s2 = inlined_call_operand.vmem [shape: f32[1,32], index: 2, kind: input, shape index: {}]   ;;  %s2132_s4 = inlined_call_operand.vmem [shape: f32[1,32], index: 4, kind: input, shape index: {}]   ;;  %s2133_s6 = inlined_call_operand.vmem [shape: f32[1,16], index: 6, kind: input, shape index: {}]   ;;  %s2134_s7 = inlined_call_operand.vmem [shape: f32[1,16], index: 7, kind: input, shape index: {}]   ;;  %s2135_s8 = inlined_call_operand.vmem [shape: f32[1,16], index: 8, kind: input, shape index: {}]   ;;  %s2136_s9 = inlined_call_operand.vmem [shape: f32[200,16], index: 9, kind: output, shape index: {}]  }
   0x1   :  { %1438 = vmatprep.subr.bf16.mxu0 %v1458_v0  ;;  %v57_v1 = vld [vmem:[%s2127_s1] sm:$0xff]  ;;  %v58_v2 = vld [vmem:[%s2127_s1 + $0x8] sm:$0xff]  ;;  %1197 = vmatprep.mubr.msk.f32.mxu0 %vm1459_vm0, %v1460_v3  ;;  %v46_v8 = vld [vmem:[%s2128_s0 + $0x70] sm:$0xff]  ;;  %vm368_vm2 = vcmask 261120  }
   0x2   :  { %v1439_v4 = vpack.c.bf16 %v58_v2, %v57_v1  ;;  %1453 = vmatprep.subr.bf16.mxu1 %v1458_v0  ;;  %1236 = vmatprep.mubr.msk.f32.mxu1 %vm1459_vm0, %v1460_v3  ;;  %v32_v5 = vld [vmem:[%s2128_s0] sm:$0xff]  ;;  %v45_v6 = vld [vmem:[%s2128_s0 + $0x68] sm:$0xff]  ;;  %v359_v11 = vld [vmem:[%s2129_s3 + $0x10] sm:$0xff] }
   0x3   :  { %v33_v7 = vld [vmem:[%s2128_s0 + $0x8] sm:$0xff]  ;;  %v357_v9 = vld [vmem:[%s2129_s3] sm:$0xff]  ;;  %v360_v13 = vld [vmem:[%s2129_s3 + $0x18] sm:$0xff] }
   0x4   :  { %1440 = vmatpush3.bf16.msra.mxu0 %v1439_v4  ;;  %1454 = vmatpush3.bf16.msra.mxu1 %v1439_v4  ;;  %v358_v10 = vld [vmem:[%s2129_s3 + $0x8] sm:$0xff]  ;;  %v34_v14 = vld [vmem:[%s2128_s0 + $0x10] sm:$0xff]  ;;  %v47_v15 = vld [vmem:[%s2128_s0 + $0x78] sm:$0xff]  ;;  %v1445_v16 = vpack.c.bf16 %v360_v13, %v359_v11 }
   0x5   :  { %1441 = vmatprep.subr.bf16.mxu1 %v1458_v0  ;;  %1447 = vmatprep.subr.bf16.mxu0 %v1458_v0  ;;  %v1442_v12 = vpack.c.bf16 %v358_v10, %v357_v9  ;;  %v35_v17 = vld [vmem:[%s2128_s0 + $0x18] sm:$0xff]  ;;  %v48_v18 = vld [vmem:[%s2128_s0 + $0x80] sm:$0xff]  ;;  %v49_v20 = vld [vmem:[%s2128_s0 + $0x88] sm:$0xff] }
   0x6   :  { %v36_v19 = vld [vmem:[%s2128_s0 + $0x20] sm:$0xff]  ;;  %v37_v21 = vld [vmem:[%s2128_s0 + $0x28] sm:$0xff]  ;;  %v50_v22 = vld [vmem:[%s2128_s0 + $0x90] sm:$0xff] }
   0x7   :  { %1198 = vmatmul.mubr.msk.f32.vlgmr.msra.gmra.mrb[0].mxu0 %vm66_vm1, %v32_v5  ;;  %1237 = vmatmul.mubr.msk.f32.vlgmr.msra.gmra.mrb[0].mxu1 %vm66_vm1, %v45_v6  ;;  %v38_v23 = vld [vmem:[%s2128_s0 + $0x30] sm:$0xff]  ;;  %v51_v24 = vld [vmem:[%s2128_s0 + $0x98] sm:$0xff]  ;;  %v52_v26 = vld [vmem:[%s2128_s0 + $0xa0] sm:$0xff] }
   0x8   :  { %1200 = vmatprep.mubr.msk.f32.mxu0 %vm1459_vm0, %v1460_v3  ;;  %1239 = vmatprep.mubr.msk.f32.mxu1 %vm1459_vm0, %v1460_v3  ;;  %v39_v25 = vld [vmem:[%s2128_s0 + $0x38] sm:$0xff]  ;;  %v40_v27 = vld [vmem:[%s2128_s0 + $0x40] sm:$0xff]  ;;  %v53_v28 = vld [vmem:[%s2128_s0 + $0xa8] sm:$0xff] }
   0x9   :  { %1443 = vmatpush3.bf16.msra.mxu1 %v1442_v12  ;;  %v41_v29 = vld [vmem:[%s2128_s0 + $0x48] sm:$0xff]  ;;  %v54_v30 = vld [vmem:[%s2128_s0 + $0xb0] sm:$0xff]  ;;  %v55_v32 = vld [vmem:[%s2128_s0 + $0xb8] sm:$0xff] }
   0xa   :  { %1444 = vmatprep.subr.bf16.mxu1 %v1458_v0  ;;  %v42_v31 = vld [vmem:[%s2128_s0 + $0x50] sm:$0xff]  ;;  %v43_v33 = vld [vmem:[%s2128_s0 + $0x58] sm:$0xff]  ;;  %v56_v34 = vld [vmem:[%s2128_s0 + $0xc0] sm:$0xff] }
   0xb   :  { %1201 = vmatmul.mubr.msk.f32.gmra.mrb[2].mxu0 %vm66_vm1, %v33_v7  ;;  %1240 = vmatmul.mubr.msk.f32.gmra.mrb[2].mxu1 %vm66_vm1, %v46_v8  ;;  %v44_v35 = vld [vmem:[%s2128_s0 + $0x60] sm:$0xff]  ;;  %v660_v37 = vld [vmem:[%s2130_s5 + $0x8] sm:$0xff]  ;;  %v661_v38 = vld [vmem:[%s2130_s5 + $0x10] sm:$0xff] }
   0xc   :  { %1203 = vmatprep.mubr.msk.f32.mxu0 %vm1459_vm0, %v1460_v3  ;;  %1242 = vmatprep.mubr.msk.f32.mxu1 %vm1459_vm0, %v1460_v3  ;;  %v659_v36 = vld [vmem:[%s2130_s5] sm:$0xff]  ;;  %v662_v40 = vld [vmem:[%s2130_s5 + $0x18] sm:$0xff] }
   0xd   :  { %1446 = vmatpush3.bf16.msra.mxu1 %v1445_v16  ;;  %v1448_v39 = vpack.c.bf16 %v660_v37, %v659_v36  ;;  %v1451_v41 = vpack.c.bf16 %v662_v40, %v661_v38  ;;  %v1704_v42 = vld [vmem:[%s2131_s2] ss:$0 sm:$0xff] }
   0xf   :  { %1204 = vmatmul.mubr.msk.f32.gmra.mrb[4].mxu0 %vm66_vm1, %v34_v14  ;;  %1243 = vmatmul.mubr.msk.f32.gmra.mrb[4].mxu1 %vm66_vm1, %v47_v15 }
  0x10   :  { %1206 = vmatprep.mubr.msk.f32.mxu0 %vm1459_vm0, %v1460_v3  ;;  %1245 = vmatprep.mubr.msk.f32.mxu1 %vm1459_vm0, %v1460_v3 }
  0x11   :  { %1449 = vmatpush3.bf16.msra.mxu0 %v1448_v39 }
  0x12   :  { %1450 = vmatprep.subr.bf16.mxu0 %v1458_v0 }
  0x13   :  { %1207 = vmatmul.mubr.msk.f32.gmra.mrb[6].mxu0 %vm66_vm1, %v35_v17  ;;  %1246 = vmatmul.mubr.msk.f32.gmra.mrb[6].mxu1 %vm66_vm1, %v48_v18 }
  0x14   :  { %1209 = vmatprep.mubr.msk.f32.mxu0 %vm1459_vm0, %v1460_v3  ;;  %1248 = vmatprep.mubr.msk.f32.mxu1 %vm1459_vm0, %v1460_v3 }
  0x15   :  { %1452 = vmatpush3.bf16.msra.mxu0 %v1451_v41 }
  0x17   :  { %1210 = vmatmul.mubr.msk.f32.gmra.mrb[8].mxu0 %vm66_vm1, %v36_v19  ;;  %1249 = vmatmul.mubr.msk.f32.gmra.mrb[8].mxu1 %vm66_vm1, %v49_v20 }
  0x18   :  { %1212 = vmatprep.mubr.msk.f32.mxu0 %vm1459_vm0, %v1460_v3  ;;  %1251 = vmatprep.mubr.msk.f32.mxu1 %vm1459_vm0, %v1460_v3 }
  0x1b   :  { %1213 = vmatmul.mubr.msk.f32.gmra.mrb[10].mxu0 %vm66_vm1, %v37_v21  ;;  %1252 = vmatmul.mubr.msk.f32.gmra.mrb[10].mxu1 %vm66_vm1, %v50_v22 }
  0x1c   :  { %1215 = vmatprep.mubr.msk.f32.mxu0 %vm1459_vm0, %v1460_v3  ;;  %1254 = vmatprep.mubr.msk.f32.mxu1 %vm1459_vm0, %v1460_v3 }
  0x1f   :  { %1216 = vmatmul.mubr.msk.f32.gmra.mrb[12].mxu0 %vm66_vm1, %v38_v23  ;;  %1255 = vmatmul.mubr.msk.f32.gmra.mrb[12].mxu1 %vm66_vm1, %v51_v24 }
  0x20   :  { %1218 = vmatprep.mubr.msk.f32.mxu0 %vm1459_vm0, %v1460_v3  ;;  %1257 = vmatprep.mubr.msk.f32.mxu1 %vm1459_vm0, %v1460_v3 }
  0x23   :  { %1219 = vmatmul.mubr.msk.f32.gmra.mrb[14].mxu0 %vm66_vm1, %v39_v25  ;;  %1258 = vmatmul.mubr.msk.f32.gmra.mrb[14].mxu1 %vm66_vm1, %v52_v26 }
  0x24   :  { %1221 = vmatprep.mubr.msk.f32.mxu0 %vm1459_vm0, %v1460_v3  ;;  %1260 = vmatprep.mubr.msk.f32.mxu1 %vm1459_vm0, %v1460_v3 }
  0x27   :  { %1222 = vmatmul.mubr.msk.f32.gmra.mrb[16].mxu0 %vm66_vm1, %v40_v27  ;;  %1261 = vmatmul.mubr.msk.f32.gmra.mrb[16].mxu1 %vm66_vm1, %v53_v28 }
  0x28   :  { %1224 = vmatprep.mubr.msk.f32.mxu0 %vm1459_vm0, %v1460_v3  ;;  %1263 = vmatprep.mubr.msk.f32.mxu1 %vm1459_vm0, %v1460_v3 }
  0x2b   :  { %1225 = vmatmul.mubr.msk.f32.gmra.mrb[18].mxu0 %vm66_vm1, %v41_v29  ;;  %1264 = vmatmul.mubr.msk.f32.gmra.mrb[18].mxu1 %vm66_vm1, %v54_v30 }
  0x2c   :  { %1227 = vmatprep.mubr.msk.f32.mxu0 %vm1459_vm0, %v1460_v3  ;;  %1266 = vmatprep.mubr.msk.f32.mxu1 %vm1459_vm0, %v1460_v3 }
  0x2f   :  { %1228 = vmatmul.mubr.msk.f32.gmra.mrb[20].mxu0 %vm66_vm1, %v42_v31  ;;  %1267 = vmatmul.mubr.msk.f32.gmra.mrb[20].mxu1 %vm66_vm1, %v55_v32 }
  0x30   :  { %1230 = vmatprep.mubr.msk.f32.mxu0 %vm1459_vm0, %v1460_v3  ;;  %1269 = vmatprep.mubr.msk.f32.mxu1 %vm1459_vm0, %v1460_v3 }
  0x33   :  { %1231 = vmatmul.mubr.msk.f32.gmra.mrb[22].mxu0 %vm66_vm1, %v43_v33  ;;  %1270 = vmatmul.mubr.msk.f32.gmra.mrb[22].mxu1 %vm66_vm1, %v56_v34 }
  0x34   :  { %1233 = vmatprep.mubr.msk.f32.mxu0 %vm1459_vm0, %v1460_v3  ;;  %1280 = vmatprep.mubr.msk.f32.mxu1 %vm1459_vm0, %v1460_v3 }
  0x37   :  { %1234 = vmatmul.mubr.msk.f32.gmra.mrb[24].mxu0 %vm66_vm1, %v44_v35 }
  0x38   :  { %1363 = vmatprep.mubr.msk.f32.mxu0 %vm1459_vm0, %v1460_v3 }
  0xda   :  { %v208_v43 = vpop.f32.mrb[0].mxu0  ;;  %v1706_v44 = vpop.f32.mrb[0].mxu1 }
  0xdb   :  { %v209_v45 = vadd.f32 %v1704_v42, %v208_v43  ;;  %v1199_v46 = vpop.f32.mrb[1].mxu0  ;;  %v1238_v47 = vpop.f32.mrb[1].mxu1 }
  0xdd   :  { %v332_v48 = vmax.f32 %v209_v45, 0.0 }
  0xde   :  { %v213_v49 = vpop.f32.mrb[2].mxu0  ;;  %v1709_v50 = vpop.f32.mrb[2].mxu1 }
  0xdf   :  { %v214_v51 = vadd.f32 %v1704_v42, %v213_v49  ;;  %v1202_v52 = vpop.f32.mrb[3].mxu0  ;;  %1281 = vmatmul.mubr.msk.f32.vlgmr.msra.gmra.mrb[24].mxu1 %vm368_vm2, %v332_v48  ;;  %v1241_v53 = vpop.f32.mrb[3].mxu1 }
  0xe0   :  { %1283 = vmatprep.mubr.msk.f32.mxu1 %vm1459_vm0, %v1460_v3 }
  0xe1   :  { %v333_v54 = vmax.f32 %v214_v51, 0.0 }
  0xe2   :  { %v218_v55 = vpop.f32.mrb[4].mxu0  ;;  %v1715_v56 = vpop.f32.mrb[4].mxu1 }
  0xe3   :  { %v219_v57 = vadd.f32 %v1704_v42, %v218_v55  ;;  %v1205_v58 = vpop.f32.mrb[5].mxu0  ;;  %1284 = vmatmul.mubr.msk.f32.gmra.mrb[26].mxu1 %vm368_vm2, %v333_v54  ;;  %v1244_v59 = vpop.f32.mrb[5].mxu1 }
  0xe4   :  { %1286 = vmatprep.mubr.msk.f32.mxu1 %vm1459_vm0, %v1460_v3 }
  0xe5   :  { %v334_v60 = vmax.f32 %v219_v57, 0.0 }
  0xe6   :  { %v223_v61 = vpop.f32.mrb[6].mxu0  ;;  %v288_v62 = vpop.f32.mrb[6].mxu1 }
  0xe7   :  { %v224_v63 = vadd.f32 %v1704_v42, %v223_v61  ;;  %v1208_v0 = vpop.f32.mrb[7].mxu0  ;;  %1287 = vmatmul.mubr.msk.f32.gmra.mrb[28].mxu1 %vm368_vm2, %v334_v60  ;;  %v1724_v1 = vadd.f32 %v1704_v42, %v288_v62  ;;  %v1247_v2 = vpop.f32.mrb[7].mxu1 }
  0xe8   :  { %1289 = vmatprep.mubr.msk.f32.mxu1 %vm1459_vm0, %v1460_v3 }
  0xe9   :  { %v335_v4 = vmax.f32 %v224_v63, 0.0 }
  0xea   :  { %v228_v5 = vpop.f32.mrb[8].mxu0  ;;  %v293_v6 = vpop.f32.mrb[8].mxu1 }
  0xeb   :  { %v229_v7 = vadd.f32 %v1704_v42, %v228_v5  ;;  %v1211_v8 = vpop.f32.mrb[9].mxu0  ;;  %1290 = vmatmul.mubr.msk.f32.gmra.mrb[30].mxu1 %vm368_vm2, %v335_v4  ;;  %v1731_v9 = vadd.f32 %v1704_v42, %v293_v6  ;;  %v1250_v10 = vpop.f32.mrb[9].mxu1  ;;  %v274_v6 = vadd.f32 %v1704_v42, %v1706_v44 }
  0xec   :  { %1292 = vmatprep.mubr.msk.f32.mxu1 %vm1459_vm0, %v1460_v3  ;;  %v279_v10 = vadd.f32 %v1704_v42, %v1709_v50  ;;  %v348_v50 = vmax.f32 %v1724_v1, 0.0 }
  0xed   :  { %v336_v11 = vmax.f32 %v229_v7, 0.0  ;;  %v345_v8 = vmax.f32 %v274_v6, 0.0 }
  0xee   :  { %v233_v12 = vpop.f32.mrb[10].mxu0  ;;  %v298_v13 = vpop.f32.mrb[10].mxu1 }
  0xef   :  { %v234_v14 = vadd.f32 %v1704_v42, %v233_v12  ;;  %v1214_v15 = vpop.f32.mrb[11].mxu0  ;;  %1293 = vmatmul.mubr.msk.f32.gmra.mrb[32].mxu1 %vm368_vm2, %v336_v11  ;;  %v1738_v16 = vadd.f32 %v1704_v42, %v298_v13  ;;  %v1253_v17 = vpop.f32.mrb[11].mxu1  ;;  %v346_v11 = vmax.f32 %v279_v10, 0.0  ;;  %v284_v12 = vadd.f32 %v1704_v42, %v1715_v56 }
  0xf0   :  { %1295 = vmatprep.mubr.msk.f32.mxu1 %vm1459_vm0, %v1460_v3  ;;  %v349_v13 = vmax.f32 %v1731_v9, 0.0  ;;  %v1837_v17 = vld [vmem:[%s2132_s4] ss:$0 sm:$0xff] }
  0xf1   :  { %v337_v18 = vmax.f32 %v234_v14, 0.0  ;;  %v347_v44 = vmax.f32 %v284_v12, 0.0 }
  0xf2   :  { %v238_v19 = vpop.f32.mrb[12].mxu0  ;;  %v303_v20 = vpop.f32.mrb[12].mxu1 }
  0xf3   :  { %v239_v21 = vadd.f32 %v1704_v42, %v238_v19  ;;  %v1217_v22 = vpop.f32.mrb[13].mxu0  ;;  %1296 = vmatmul.mubr.msk.f32.gmra.mrb[34].mxu1 %vm368_vm2, %v337_v18  ;;  %v1745_v23 = vadd.f32 %v1704_v42, %v303_v20  ;;  %v1256_v24 = vpop.f32.mrb[13].mxu1 }
  0xf4   :  { %1298 = vmatprep.mubr.msk.f32.mxu1 %vm1459_vm0, %v1460_v3 }
  0xf5   :  { %v338_v25 = vmax.f32 %v239_v21, 0.0  ;;  %v351_v56 = vmax.f32 %v1745_v23, 0.0 }
  0xf6   :  { %v243_v26 = vpop.f32.mrb[14].mxu0  ;;  %v308_v27 = vpop.f32.mrb[14].mxu1 }
  0xf7   :  { %v244_v28 = vadd.f32 %v1704_v42, %v243_v26  ;;  %v1220_v29 = vpop.f32.mrb[15].mxu0  ;;  %1299 = vmatmul.mubr.msk.f32.gmra.mrb[36].mxu1 %vm368_vm2, %v338_v25  ;;  %v1752_v30 = vadd.f32 %v1704_v42, %v308_v27  ;;  %v1259_v31 = vpop.f32.mrb[15].mxu1 }
  0xf8   :  { %1301 = vmatprep.mubr.msk.f32.mxu1 %vm1459_vm0, %v1460_v3 }
  0xf9   :  { %v339_v32 = vmax.f32 %v244_v28, 0.0  ;;  %v352_v1 = vmax.f32 %v1752_v30, 0.0 }
  0xfa   :  { %v248_v33 = vpop.f32.mrb[16].mxu0  ;;  %v313_v34 = vpop.f32.mrb[16].mxu1 }
  0xfb   :  { %v249_v35 = vadd.f32 %v1704_v42, %v248_v33  ;;  %v1223_v36 = vpop.f32.mrb[17].mxu0  ;;  %1302 = vmatmul.mubr.msk.f32.gmra.mrb[38].mxu1 %vm368_vm2, %v339_v32  ;;  %v1759_v37 = vadd.f32 %v1704_v42, %v313_v34  ;;  %v1262_v38 = vpop.f32.mrb[17].mxu1 }
  0xfc   :  { %1304 = vmatprep.mubr.msk.f32.mxu1 %vm1459_vm0, %v1460_v3 }
  0xfd   :  { %v340_v39 = vmax.f32 %v249_v35, 0.0  ;;  %v353_v9 = vmax.f32 %v1759_v37, 0.0 }
  0xfe   :  { %v253_v40 = vpop.f32.mrb[18].mxu0  ;;  %v318_v41 = vpop.f32.mrb[18].mxu1 }
  0xff   :  { %v254_v43 = vadd.f32 %v1704_v42, %v253_v40  ;;  %v1226_v45 = vpop.f32.mrb[19].mxu0  ;;  %1305 = vmatmul.mubr.msk.f32.gmra.mrb[40].mxu1 %vm368_vm2, %v340_v39  ;;  %v1766_v46 = vadd.f32 %v1704_v42, %v318_v41  ;;  %v1265_v47 = vpop.f32.mrb[19].mxu1 }
 0x100   :  { %1307 = vmatprep.mubr.msk.f32.mxu1 %vm1459_vm0, %v1460_v3 }
 0x101   :  { %v341_v48 = vmax.f32 %v254_v43, 0.0  ;;  %v354_v14 = vmax.f32 %v1766_v46, 0.0 }
 0x102   :  { %v258_v49 = vpop.f32.mrb[20].mxu0  ;;  %v323_v51 = vpop.f32.mrb[20].mxu1 }
 0x103   :  { %v259_v52 = vadd.f32 %v1704_v42, %v258_v49  ;;  %v1229_v53 = vpop.f32.mrb[21].mxu0  ;;  %1308 = vmatmul.mubr.msk.f32.gmra.mrb[42].mxu1 %vm368_vm2, %v341_v48  ;;  %v324_v54 = vadd.f32 %v1704_v42, %v323_v51  ;;  %v1268_v55 = vpop.f32.mrb[21].mxu1 }
 0x104   :  { %1310 = vmatprep.mubr.msk.f32.mxu1 %vm1459_vm0, %v1460_v3 }
 0x105   :  { %v342_v57 = vmax.f32 %v259_v52, 0.0  ;;  %v355_v15 = vmax.f32 %v324_v54, 0.0 }
 0x106   :  { %v263_v58 = vpop.f32.mrb[22].mxu0  ;;  %v328_v59 = vpop.f32.mrb[22].mxu1 }
 0x107   :  { %v264_v60 = vadd.f32 %v1704_v42, %v263_v58  ;;  %v1232_v61 = vpop.f32.mrb[23].mxu0  ;;  %1311 = vmatmul.mubr.msk.f32.gmra.mrb[44].mxu1 %vm368_vm2, %v342_v57  ;;  %v329_v62 = vadd.f32 %v1704_v42, %v328_v59  ;;  %v1271_v63 = vpop.f32.mrb[23].mxu1 }
 0x108   :  { %1313 = vmatprep.mubr.msk.f32.mxu1 %vm1459_vm0, %v1460_v3 }
 0x109   :  { %v343_v0 = vmax.f32 %v264_v60, 0.0 }
 0x10a   :  { %v268_v2 = vpop.f32.mrb[24].mxu0 }
 0x10b   :  { %v269_v4 = vadd.f32 %v1704_v42, %v268_v2  ;;  %v1235_v5 = vpop.f32.mrb[25].mxu0  ;;  %1314 = vmatmul.mubr.msk.f32.gmra.mrb[46].mxu1 %vm368_vm2, %v343_v0  ;;  %v350_v42 = vmax.f32 %v1738_v16, 0.0  ;;  %v356_v16 = vmax.f32 %v329_v62, 0.0 }
 0x10c   :  { %1316 = vmatprep.mubr.msk.f32.mxu1 %vm1459_vm0, %v1460_v3 }
 0x10d   :  { %v344_v7 = vmax.f32 %v269_v4, 0.0 }
 0x10f   :  { %1317 = vmatmul.mubr.msk.f32.gmra.mrb[48].mxu1 %vm368_vm2, %v344_v7 }
 0x110   :  { %1319 = vmatprep.mubr.msk.f32.mxu1 %vm1459_vm0, %v1460_v3 }
 0x113   :  { %1320 = vmatmul.mubr.msk.f32.gmra.mrb[50].mxu1 %vm368_vm2, %v345_v8 }
 0x114   :  { %1322 = vmatprep.mubr.msk.f32.mxu1 %vm1459_vm0, %v1460_v3 }
 0x117   :  { %1323 = vmatmul.mubr.msk.f32.gmra.mrb[52].mxu1 %vm368_vm2, %v346_v11 }
 0x118   :  { %1325 = vmatprep.mubr.msk.f32.mxu1 %vm1459_vm0, %v1460_v3 }
 0x11b   :  { %1326 = vmatmul.mubr.msk.f32.gmra.mrb[54].mxu1 %vm368_vm2, %v347_v44 }
 0x11c   :  { %1328 = vmatprep.mubr.msk.f32.mxu1 %vm1459_vm0, %v1460_v3 }
 0x11f   :  { %1329 = vmatmul.mubr.msk.f32.gmra.mrb[56].mxu1 %vm368_vm2, %v348_v50 }
 0x120   :  { %1331 = vmatprep.mubr.msk.f32.mxu1 %vm1459_vm0, %v1460_v3 }
 0x123   :  { %1332 = vmatmul.mubr.msk.f32.gmra.mrb[58].mxu1 %vm368_vm2, %v349_v13 }
 0x124   :  { %1334 = vmatprep.mubr.msk.f32.mxu1 %vm1459_vm0, %v1460_v3 }
 0x127   :  { %1335 = vmatmul.mubr.msk.f32.gmra.mrb[60].mxu1 %vm368_vm2, %v350_v42 }
 0x128   :  { %1337 = vmatprep.mubr.msk.f32.mxu1 %vm1459_vm0, %v1460_v3 }
 0x12b   :  { %1338 = vmatmul.mubr.msk.f32.gmra.mrb[62].mxu1 %vm368_vm2, %v351_v56 }
 0x12c   :  { %1340 = vmatprep.mubr.msk.f32.mxu1 %vm1459_vm0, %v1460_v3 }
 0x12f   :  { %1341 = vmatmul.mubr.msk.f32.gmra.mrb[64].mxu1 %vm368_vm2, %v352_v1 }
 0x130   :  { %1343 = vmatprep.mubr.msk.f32.mxu1 %vm1459_vm0, %v1460_v3 }
 0x133   :  { %1344 = vmatmul.mubr.msk.f32.gmra.mrb[66].mxu1 %vm368_vm2, %v353_v9 }
 0x134   :  { %1346 = vmatprep.mubr.msk.f32.mxu1 %vm1459_vm0, %v1460_v3 }
 0x137   :  { %1347 = vmatmul.mubr.msk.f32.gmra.mrb[68].mxu1 %vm368_vm2, %v354_v14 }
 0x138   :  { %1349 = vmatprep.mubr.msk.f32.mxu1 %vm1459_vm0, %v1460_v3 }
 0x13b   :  { %1350 = vmatmul.mubr.msk.f32.gmra.mrb[70].mxu1 %vm368_vm2, %v355_v15 }
 0x13c   :  { %1352 = vmatprep.mubr.msk.f32.mxu1 %vm1459_vm0, %v1460_v3 }
 0x13f   :  { %1353 = vmatmul.mubr.msk.f32.gmra.mrb[72].mxu1 %vm368_vm2, %v356_v16 }
 0x1b2   :  { %v510_v18 = vpop.f32.mrb[24].mxu1 }
 0x1b3   :  { %v511_v19 = vadd.f32 %v1837_v17, %v510_v18  ;;  %v1282_v20 = vpop.f32.mrb[25].mxu1 }
 0x1b5   :  { %v634_v21 = vmax.f32 %v511_v19, 0.0 }
 0x1b6   :  { %v515_v22 = vpop.f32.mrb[26].mxu1 }
 0x1b7   :  { %v516_v23 = vadd.f32 %v1837_v17, %v515_v22  ;;  %v1285_v24 = vpop.f32.mrb[27].mxu1  ;;  %1364 = vmatmul.mubr.msk.f32.vlgmr.msra.gmra.mrb[26].mxu0 %vm368_vm2, %v634_v21 }
 0x1b8   :  { %1366 = vmatprep.mubr.msk.f32.mxu0 %vm1459_vm0, %v1460_v3 }
 0x1b9   :  { %v635_v25 = vmax.f32 %v516_v23, 0.0 }
 0x1ba   :  { %v520_v26 = vpop.f32.mrb[28].mxu1 }
 0x1bb   :  { %v521_v27 = vadd.f32 %v1837_v17, %v520_v26  ;;  %v1288_v28 = vpop.f32.mrb[29].mxu1  ;;  %1367 = vmatmul.mubr.msk.f32.gmra.mrb[28].mxu0 %vm368_vm2, %v635_v25 }
 0x1bc   :  { %1369 = vmatprep.mubr.msk.f32.mxu0 %vm1459_vm0, %v1460_v3 }
 0x1bd   :  { %v636_v29 = vmax.f32 %v521_v27, 0.0 }
 0x1be   :  { %v525_v30 = vpop.f32.mrb[30].mxu1 }
 0x1bf   :  { %v526_v31 = vadd.f32 %v1837_v17, %v525_v30  ;;  %v1291_v32 = vpop.f32.mrb[31].mxu1  ;;  %1370 = vmatmul.mubr.msk.f32.gmra.mrb[30].mxu0 %vm368_vm2, %v636_v29 }
 0x1c0   :  { %1372 = vmatprep.mubr.msk.f32.mxu0 %vm1459_vm0, %v1460_v3 }
 0x1c1   :  { %v637_v33 = vmax.f32 %v526_v31, 0.0 }
 0x1c2   :  { %v530_v34 = vpop.f32.mrb[32].mxu1 }
 0x1c3   :  { %v531_v35 = vadd.f32 %v1837_v17, %v530_v34  ;;  %v1294_v36 = vpop.f32.mrb[33].mxu1  ;;  %1373 = vmatmul.mubr.msk.f32.gmra.mrb[32].mxu0 %vm368_vm2, %v637_v33 }
 0x1c4   :  { %1375 = vmatprep.mubr.msk.f32.mxu0 %vm1459_vm0, %v1460_v3 }
 0x1c5   :  { %v638_v37 = vmax.f32 %v531_v35, 0.0 }
 0x1c6   :  { %v535_v38 = vpop.f32.mrb[34].mxu1 }
 0x1c7   :  { %v536_v39 = vadd.f32 %v1837_v17, %v535_v38  ;;  %v1297_v40 = vpop.f32.mrb[35].mxu1  ;;  %1376 = vmatmul.mubr.msk.f32.gmra.mrb[34].mxu0 %vm368_vm2, %v638_v37 }
 0x1c8   :  { %1378 = vmatprep.mubr.msk.f32.mxu0 %vm1459_vm0, %v1460_v3 }
 0x1c9   :  { %v639_v41 = vmax.f32 %v536_v39, 0.0 }
 0x1ca   :  { %v540_v43 = vpop.f32.mrb[36].mxu1 }
 0x1cb   :  { %v541_v45 = vadd.f32 %v1837_v17, %v540_v43  ;;  %v1300_v46 = vpop.f32.mrb[37].mxu1  ;;  %1379 = vmatmul.mubr.msk.f32.gmra.mrb[36].mxu0 %vm368_vm2, %v639_v41 }
 0x1cc   :  { %1381 = vmatprep.mubr.msk.f32.mxu0 %vm1459_vm0, %v1460_v3 }
 0x1cd   :  { %v640_v47 = vmax.f32 %v541_v45, 0.0 }
 0x1ce   :  { %v545_v48 = vpop.f32.mrb[38].mxu1 }
 0x1cf   :  { %v546_v49 = vadd.f32 %v1837_v17, %v545_v48  ;;  %v1303_v51 = vpop.f32.mrb[39].mxu1  ;;  %1382 = vmatmul.mubr.msk.f32.gmra.mrb[38].mxu0 %vm368_vm2, %v640_v47 }
 0x1d0   :  { %1384 = vmatprep.mubr.msk.f32.mxu0 %vm1459_vm0, %v1460_v3 }
 0x1d1   :  { %v641_v52 = vmax.f32 %v546_v49, 0.0 }
 0x1d2   :  { %v550_v53 = vpop.f32.mrb[40].mxu1 }
 0x1d3   :  { %v551_v54 = vadd.f32 %v1837_v17, %v550_v53  ;;  %v1306_v55 = vpop.f32.mrb[41].mxu1  ;;  %1385 = vmatmul.mubr.msk.f32.gmra.mrb[40].mxu0 %vm368_vm2, %v641_v52 }
 0x1d4   :  { %1387 = vmatprep.mubr.msk.f32.mxu0 %vm1459_vm0, %v1460_v3 }
 0x1d5   :  { %v642_v57 = vmax.f32 %v551_v54, 0.0 }
 0x1d6   :  { %v555_v58 = vpop.f32.mrb[42].mxu1 }
 0x1d7   :  { %v556_v59 = vadd.f32 %v1837_v17, %v555_v58  ;;  %v1309_v60 = vpop.f32.mrb[43].mxu1  ;;  %1388 = vmatmul.mubr.msk.f32.gmra.mrb[42].mxu0 %vm368_vm2, %v642_v57 }
 0x1d8   :  { %1390 = vmatprep.mubr.msk.f32.mxu0 %vm1459_vm0, %v1460_v3  ;;  %v1940_v60 = vld [vmem:[%s2133_s6] ss:$0 sm:$0xff] }
 0x1d9   :  { %v643_v61 = vmax.f32 %v556_v59, 0.0 }
 0x1da   :  { %v560_v62 = vpop.f32.mrb[44].mxu1 }
 0x1db   :  { %v561_v63 = vadd.f32 %v1837_v17, %v560_v62  ;;  %v1312_v0 = vpop.f32.mrb[45].mxu1  ;;  %1391 = vmatmul.mubr.msk.f32.gmra.mrb[44].mxu0 %vm368_vm2, %v643_v61  ;;  %v1945_v62 = vld [vmem:[%s2134_s7] ss:$0 sm:$0xff] }
 0x1dc   :  { %1393 = vmatprep.mubr.msk.f32.mxu0 %vm1459_vm0, %v1460_v3 }
 0x1dd   :  { %v644_v2 = vmax.f32 %v561_v63, 0.0 }
 0x1de   :  { %v565_v4 = vpop.f32.mrb[46].mxu1 }
 0x1df   :  { %v566_v5 = vadd.f32 %v1837_v17, %v565_v4  ;;  %v1315_v6 = vpop.f32.mrb[47].mxu1  ;;  %1394 = vmatmul.mubr.msk.f32.gmra.mrb[46].mxu0 %vm368_vm2, %v644_v2 }
 0x1e0   :  { %1396 = vmatprep.mubr.msk.f32.mxu0 %vm1459_vm0, %v1460_v3 }
 0x1e1   :  { %v645_v7 = vmax.f32 %v566_v5, 0.0 }
 0x1e2   :  { %v570_v8 = vpop.f32.mrb[48].mxu1 }
 0x1e3   :  { %v571_v10 = vadd.f32 %v1837_v17, %v570_v8  ;;  %v1318_v11 = vpop.f32.mrb[49].mxu1  ;;  %1397 = vmatmul.mubr.msk.f32.gmra.mrb[48].mxu0 %vm368_vm2, %v645_v7 }
 0x1e4   :  { %1399 = vmatprep.mubr.msk.f32.mxu0 %vm1459_vm0, %v1460_v3 }
 0x1e5   :  { %v646_v12 = vmax.f32 %v571_v10, 0.0 }
 0x1e6   :  { %v575_v44 = vpop.f32.mrb[50].mxu1 }
 0x1e7   :  { %v576_v50 = vadd.f32 %v1837_v17, %v575_v44  ;;  %v1321_v13 = vpop.f32.mrb[51].mxu1  ;;  %1400 = vmatmul.mubr.msk.f32.gmra.mrb[50].mxu0 %vm368_vm2, %v646_v12 }
 0x1e8   :  { %1402 = vmatprep.mubr.msk.f32.mxu0 %vm1459_vm0, %v1460_v3 }
 0x1e9   :  { %v647_v42 = vmax.f32 %v576_v50, 0.0 }
 0x1ea   :  { %v580_v56 = vpop.f32.mrb[52].mxu1 }
 0x1eb   :  { %v581_v1 = vadd.f32 %v1837_v17, %v580_v56  ;;  %v1324_v9 = vpop.f32.mrb[53].mxu1  ;;  %1403 = vmatmul.mubr.msk.f32.gmra.mrb[52].mxu0 %vm368_vm2, %v647_v42 }
 0x1ec   :  { %1405 = vmatprep.mubr.msk.f32.mxu0 %vm1459_vm0, %v1460_v3 }
 0x1ed   :  { %v648_v14 = vmax.f32 %v581_v1, 0.0 }
 0x1ee   :  { %v585_v15 = vpop.f32.mrb[54].mxu1 }
 0x1ef   :  { %v586_v16 = vadd.f32 %v1837_v17, %v585_v15  ;;  %v1327_v18 = vpop.f32.mrb[55].mxu1  ;;  %1406 = vmatmul.mubr.msk.f32.gmra.mrb[54].mxu0 %vm368_vm2, %v648_v14 }
 0x1f0   :  { %1408 = vmatprep.mubr.msk.f32.mxu0 %vm1459_vm0, %v1460_v3 }
 0x1f1   :  { %v649_v19 = vmax.f32 %v586_v16, 0.0 }
 0x1f2   :  { %v590_v20 = vpop.f32.mrb[56].mxu1 }
 0x1f3   :  { %v591_v21 = vadd.f32 %v1837_v17, %v590_v20  ;;  %v1330_v22 = vpop.f32.mrb[57].mxu1  ;;  %1409 = vmatmul.mubr.msk.f32.gmra.mrb[56].mxu0 %vm368_vm2, %v649_v19 }
 0x1f4   :  { %1411 = vmatprep.mubr.msk.f32.mxu0 %vm1459_vm0, %v1460_v3 }
 0x1f5   :  { %v650_v23 = vmax.f32 %v591_v21, 0.0 }
 0x1f6   :  { %v595_v24 = vpop.f32.mrb[58].mxu1 }
 0x1f7   :  { %v596_v25 = vadd.f32 %v1837_v17, %v595_v24  ;;  %v1333_v26 = vpop.f32.mrb[59].mxu1  ;;  %1412 = vmatmul.mubr.msk.f32.gmra.mrb[58].mxu0 %vm368_vm2, %v650_v23 }
 0x1f8   :  { %1414 = vmatprep.mubr.msk.f32.mxu0 %vm1459_vm0, %v1460_v3 }
 0x1f9   :  { %v651_v27 = vmax.f32 %v596_v25, 0.0 }
 0x1fa   :  { %v600_v28 = vpop.f32.mrb[60].mxu1 }
 0x1fb   :  { %v601_v29 = vadd.f32 %v1837_v17, %v600_v28  ;;  %v1336_v30 = vpop.f32.mrb[61].mxu1  ;;  %1415 = vmatmul.mubr.msk.f32.gmra.mrb[60].mxu0 %vm368_vm2, %v651_v27 }
 0x1fc   :  { %1417 = vmatprep.mubr.msk.f32.mxu0 %vm1459_vm0, %v1460_v3 }
 0x1fd   :  { %v652_v31 = vmax.f32 %v601_v29, 0.0 }
 0x1fe   :  { %v605_v32 = vpop.f32.mrb[62].mxu1 }
 0x1ff   :  { %v606_v33 = vadd.f32 %v1837_v17, %v605_v32  ;;  %v1339_v34 = vpop.f32.mrb[63].mxu1  ;;  %1418 = vmatmul.mubr.msk.f32.gmra.mrb[62].mxu0 %vm368_vm2, %v652_v31 }
 0x200   :  { %1420 = vmatprep.mubr.msk.f32.mxu0 %vm1459_vm0, %v1460_v3 }
 0x201   :  { %v653_v35 = vmax.f32 %v606_v33, 0.0 }
 0x202   :  { %v610_v36 = vpop.f32.mrb[64].mxu1 }
 0x203   :  { %v611_v37 = vadd.f32 %v1837_v17, %v610_v36  ;;  %v1342_v38 = vpop.f32.mrb[65].mxu1  ;;  %1421 = vmatmul.mubr.msk.f32.gmra.mrb[64].mxu0 %vm368_vm2, %v653_v35 }
 0x204   :  { %1423 = vmatprep.mubr.msk.f32.mxu0 %vm1459_vm0, %v1460_v3 }
 0x205   :  { %v654_v39 = vmax.f32 %v611_v37, 0.0 }
 0x206   :  { %v615_v40 = vpop.f32.mrb[66].mxu1 }
 0x207   :  { %v616_v41 = vadd.f32 %v1837_v17, %v615_v40  ;;  %v1345_v43 = vpop.f32.mrb[67].mxu1  ;;  %1424 = vmatmul.mubr.msk.f32.gmra.mrb[66].mxu0 %vm368_vm2, %v654_v39 }
 0x208   :  { %1426 = vmatprep.mubr.msk.f32.mxu0 %vm1459_vm0, %v1460_v3 }
 0x209   :  { %v655_v45 = vmax.f32 %v616_v41, 0.0 }
 0x20a   :  { %v620_v46 = vpop.f32.mrb[68].mxu1 }
 0x20b   :  { %v621_v47 = vadd.f32 %v1837_v17, %v620_v46  ;;  %v1348_v48 = vpop.f32.mrb[69].mxu1  ;;  %1427 = vmatmul.mubr.msk.f32.gmra.mrb[68].mxu0 %vm368_vm2, %v655_v45 }
 0x20c   :  { %1429 = vmatprep.mubr.msk.f32.mxu0 %vm1459_vm0, %v1460_v3 }
 0x20d   :  { %v656_v49 = vmax.f32 %v621_v47, 0.0 }
 0x20e   :  { %v625_v51 = vpop.f32.mrb[70].mxu1 }
 0x20f   :  { %v626_v52 = vadd.f32 %v1837_v17, %v625_v51  ;;  %v1351_v53 = vpop.f32.mrb[71].mxu1  ;;  %1430 = vmatmul.mubr.msk.f32.gmra.mrb[70].mxu0 %vm368_vm2, %v656_v49 }
 0x210   :  { %1432 = vmatprep.mubr.msk.f32.mxu0 %vm1459_vm0, %v1460_v3 }
 0x211   :  { %v657_v54 = vmax.f32 %v626_v52, 0.0 }
 0x212   :  { %v630_v55 = vpop.f32.mrb[72].mxu1 }
 0x213   :  { %v631_v57 = vadd.f32 %v1837_v17, %v630_v55  ;;  %v1354_v58 = vpop.f32.mrb[73].mxu1  ;;  %1433 = vmatmul.mubr.msk.f32.gmra.mrb[72].mxu0 %vm368_vm2, %v657_v54 }
 0x214   :  { %1435 = vmatprep.mubr.msk.f32.mxu0 %vm1459_vm0, %v1460_v3  ;;  %v1951_v3 = vld [vmem:[%s2135_s8] ss:$0 sm:$0xff] }
 0x215   :  { %v658_v59 = vmax.f32 %v631_v57, 0.0 }
 0x217   :  { %1436 = vmatmul.mubr.msk.f32.gmra.mrb[74].mxu0 %vm368_vm2, %v658_v59 }
 0x28a   :  { %v811_v61 = vpop.f32.mrb[26].mxu0 }
 0x28b   :  { %v812_v17 = vadd.f32 %v1940_v60, %v811_v61  ;;  %v1365_v63 = vpop.f32.mrb[27].mxu0 }
 0x28d   :  { %v942_v0 = vmax.f32 %v812_v17, %v1945_v62 }
 0x28e   :  { %v816_v2 = vpop.f32.mrb[28].mxu0 }
 0x28f   :  { %v974_v4 = vmin.f32 %v942_v0, %v1951_v3  ;;  %v817_v5 = vadd.f32 %v1940_v60, %v816_v2  ;;  %v1368_v6 = vpop.f32.mrb[29].mxu0 }
 0x291   :  { %999 = vst.msk [vmem:[%s2136_s9] sm:$0xff] %vm66_vm1, %v974_v4  ;;  %v943_v7 = vmax.f32 %v817_v5, %v1945_v62 }
 0x292   :  { %v821_v8 = vpop.f32.mrb[30].mxu0 }
 0x293   :  { %v975_v10 = vmin.f32 %v943_v7, %v1951_v3  ;;  %v822_v11 = vadd.f32 %v1940_v60, %v821_v8  ;;  %v1371_v12 = vpop.f32.mrb[31].mxu0 }
 0x295   :  { %1000 = vst.msk [vmem:[%s2136_s9 + $0x8] sm:$0xff] %vm66_vm1, %v975_v10  ;;  %v944_v44 = vmax.f32 %v822_v11, %v1945_v62 }
 0x296   :  { %v826_v50 = vpop.f32.mrb[32].mxu0 }
 0x297   :  { %v976_v13 = vmin.f32 %v944_v44, %v1951_v3  ;;  %v827_v42 = vadd.f32 %v1940_v60, %v826_v50  ;;  %v1374_v56 = vpop.f32.mrb[33].mxu0 }
 0x299   :  { %1001 = vst.msk [vmem:[%s2136_s9 + $0x10] sm:$0xff] %vm66_vm1, %v976_v13  ;;  %v945_v1 = vmax.f32 %v827_v42, %v1945_v62 }
 0x29a   :  { %v831_v9 = vpop.f32.mrb[34].mxu0 }
 0x29b   :  { %v977_v14 = vmin.f32 %v945_v1, %v1951_v3  ;;  %v832_v15 = vadd.f32 %v1940_v60, %v831_v9  ;;  %v1377_v16 = vpop.f32.mrb[35].mxu0 }
 0x29d   :  { %1002 = vst.msk [vmem:[%s2136_s9 + $0x18] sm:$0xff] %vm66_vm1, %v977_v14  ;;  %v946_v18 = vmax.f32 %v832_v15, %v1945_v62 }
 0x29e   :  { %v836_v19 = vpop.f32.mrb[36].mxu0 }
 0x29f   :  { %v978_v20 = vmin.f32 %v946_v18, %v1951_v3  ;;  %v837_v21 = vadd.f32 %v1940_v60, %v836_v19  ;;  %v1380_v22 = vpop.f32.mrb[37].mxu0 }
 0x2a1   :  { %1003 = vst.msk [vmem:[%s2136_s9 + $0x20] sm:$0xff] %vm66_vm1, %v978_v20  ;;  %v947_v23 = vmax.f32 %v837_v21, %v1945_v62 }
 0x2a2   :  { %v841_v24 = vpop.f32.mrb[38].mxu0 }
 0x2a3   :  { %v979_v25 = vmin.f32 %v947_v23, %v1951_v3  ;;  %v842_v26 = vadd.f32 %v1940_v60, %v841_v24  ;;  %v1383_v27 = vpop.f32.mrb[39].mxu0 }
 0x2a5   :  { %1004 = vst.msk [vmem:[%s2136_s9 + $0x28] sm:$0xff] %vm66_vm1, %v979_v25  ;;  %v948_v28 = vmax.f32 %v842_v26, %v1945_v62 }
 0x2a6   :  { %v846_v29 = vpop.f32.mrb[40].mxu0 }
 0x2a7   :  { %v980_v30 = vmin.f32 %v948_v28, %v1951_v3  ;;  %v847_v31 = vadd.f32 %v1940_v60, %v846_v29  ;;  %v1386_v32 = vpop.f32.mrb[41].mxu0 }
 0x2a9   :  { %1005 = vst.msk [vmem:[%s2136_s9 + $0x30] sm:$0xff] %vm66_vm1, %v980_v30  ;;  %v949_v33 = vmax.f32 %v847_v31, %v1945_v62 }
 0x2aa   :  { %v851_v34 = vpop.f32.mrb[42].mxu0 }
 0x2ab   :  { %v981_v35 = vmin.f32 %v949_v33, %v1951_v3  ;;  %v852_v36 = vadd.f32 %v1940_v60, %v851_v34  ;;  %v1389_v37 = vpop.f32.mrb[43].mxu0 }
 0x2ad   :  { %1006 = vst.msk [vmem:[%s2136_s9 + $0x38] sm:$0xff] %vm66_vm1, %v981_v35  ;;  %v950_v38 = vmax.f32 %v852_v36, %v1945_v62 }
 0x2ae   :  { %v856_v39 = vpop.f32.mrb[44].mxu0 }
 0x2af   :  { %v982_v40 = vmin.f32 %v950_v38, %v1951_v3  ;;  %v857_v41 = vadd.f32 %v1940_v60, %v856_v39  ;;  %v1392_v43 = vpop.f32.mrb[45].mxu0 }
 0x2b1   :  { %1007 = vst.msk [vmem:[%s2136_s9 + $0x40] sm:$0xff] %vm66_vm1, %v982_v40  ;;  %v951_v45 = vmax.f32 %v857_v41, %v1945_v62 }
 0x2b2   :  { %v861_v46 = vpop.f32.mrb[46].mxu0 }
 0x2b3   :  { %v983_v47 = vmin.f32 %v951_v45, %v1951_v3  ;;  %v862_v48 = vadd.f32 %v1940_v60, %v861_v46  ;;  %v1395_v49 = vpop.f32.mrb[47].mxu0 }
 0x2b5   :  { %1008 = vst.msk [vmem:[%s2136_s9 + $0x48] sm:$0xff] %vm66_vm1, %v983_v47  ;;  %v952_v51 = vmax.f32 %v862_v48, %v1945_v62 }
 0x2b6   :  { %v866_v52 = vpop.f32.mrb[48].mxu0 }
 0x2b7   :  { %v984_v53 = vmin.f32 %v952_v51, %v1951_v3  ;;  %v867_v54 = vadd.f32 %v1940_v60, %v866_v52  ;;  %v1398_v55 = vpop.f32.mrb[49].mxu0 }
 0x2b9   :  { %1009 = vst.msk [vmem:[%s2136_s9 + $0x50] sm:$0xff] %vm66_vm1, %v984_v53  ;;  %v953_v57 = vmax.f32 %v867_v54, %v1945_v62 }
 0x2ba   :  { %v871_v58 = vpop.f32.mrb[50].mxu0 }
 0x2bb   :  { %v985_v59 = vmin.f32 %v953_v57, %v1951_v3  ;;  %v872_v61 = vadd.f32 %v1940_v60, %v871_v58  ;;  %v1401_v17 = vpop.f32.mrb[51].mxu0 }
 0x2bd   :  { %1010 = vst.msk [vmem:[%s2136_s9 + $0x58] sm:$0xff] %vm66_vm1, %v985_v59  ;;  %v954_v63 = vmax.f32 %v872_v61, %v1945_v62 }
 0x2be   :  { %v876_v0 = vpop.f32.mrb[52].mxu0 }
 0x2bf   :  { %v986_v2 = vmin.f32 %v954_v63, %v1951_v3  ;;  %v877_v4 = vadd.f32 %v1940_v60, %v876_v0  ;;  %v1404_v5 = vpop.f32.mrb[53].mxu0 }
 0x2c1   :  { %1011 = vst.msk [vmem:[%s2136_s9 + $0x60] sm:$0xff] %vm66_vm1, %v986_v2  ;;  %v955_v6 = vmax.f32 %v877_v4, %v1945_v62 }
 0x2c2   :  { %v881_v7 = vpop.f32.mrb[54].mxu0 }
 0x2c3   :  { %v987_v8 = vmin.f32 %v955_v6, %v1951_v3  ;;  %v882_v10 = vadd.f32 %v1940_v60, %v881_v7  ;;  %v1407_v11 = vpop.f32.mrb[55].mxu0 }
 0x2c5   :  { %1012 = vst.msk [vmem:[%s2136_s9 + $0x68] sm:$0xff] %vm66_vm1, %v987_v8  ;;  %v956_v12 = vmax.f32 %v882_v10, %v1945_v62 }
 0x2c6   :  { %v886_v44 = vpop.f32.mrb[56].mxu0 }
 0x2c7   :  { %v988_v50 = vmin.f32 %v956_v12, %v1951_v3  ;;  %v887_v13 = vadd.f32 %v1940_v60, %v886_v44  ;;  %v1410_v42 = vpop.f32.mrb[57].mxu0 }
 0x2c9   :  { %1013 = vst.msk [vmem:[%s2136_s9 + $0x70] sm:$0xff] %vm66_vm1, %v988_v50  ;;  %v957_v56 = vmax.f32 %v887_v13, %v1945_v62 }
 0x2ca   :  { %v891_v1 = vpop.f32.mrb[58].mxu0 }
 0x2cb   :  { %v989_v9 = vmin.f32 %v957_v56, %v1951_v3  ;;  %v892_v14 = vadd.f32 %v1940_v60, %v891_v1  ;;  %v1413_v15 = vpop.f32.mrb[59].mxu0 }
 0x2cd   :  { %1014 = vst.msk [vmem:[%s2136_s9 + $0x78] sm:$0xff] %vm66_vm1, %v989_v9  ;;  %v958_v16 = vmax.f32 %v892_v14, %v1945_v62 }
 0x2ce   :  { %v896_v18 = vpop.f32.mrb[60].mxu0 }
 0x2cf   :  { %v990_v19 = vmin.f32 %v958_v16, %v1951_v3  ;;  %v897_v20 = vadd.f32 %v1940_v60, %v896_v18  ;;  %v1416_v21 = vpop.f32.mrb[61].mxu0 }
 0x2d1   :  { %1015 = vst.msk [vmem:[%s2136_s9 + $0x80] sm:$0xff] %vm66_vm1, %v990_v19  ;;  %v959_v22 = vmax.f32 %v897_v20, %v1945_v62 }
 0x2d2   :  { %v901_v23 = vpop.f32.mrb[62].mxu0 }
 0x2d3   :  { %v991_v24 = vmin.f32 %v959_v22, %v1951_v3  ;;  %v902_v25 = vadd.f32 %v1940_v60, %v901_v23  ;;  %v1419_v26 = vpop.f32.mrb[63].mxu0 }
 0x2d5   :  { %1016 = vst.msk [vmem:[%s2136_s9 + $0x88] sm:$0xff] %vm66_vm1, %v991_v24  ;;  %v960_v27 = vmax.f32 %v902_v25, %v1945_v62 }
 0x2d6   :  { %v906_v28 = vpop.f32.mrb[64].mxu0 }
 0x2d7   :  { %v992_v29 = vmin.f32 %v960_v27, %v1951_v3  ;;  %v907_v30 = vadd.f32 %v1940_v60, %v906_v28  ;;  %v1422_v31 = vpop.f32.mrb[65].mxu0 }
 0x2d9   :  { %1017 = vst.msk [vmem:[%s2136_s9 + $0x90] sm:$0xff] %vm66_vm1, %v992_v29  ;;  %v961_v32 = vmax.f32 %v907_v30, %v1945_v62 }
 0x2da   :  { %v911_v33 = vpop.f32.mrb[66].mxu0 }
 0x2db   :  { %v993_v34 = vmin.f32 %v961_v32, %v1951_v3  ;;  %v912_v35 = vadd.f32 %v1940_v60, %v911_v33  ;;  %v1425_v36 = vpop.f32.mrb[67].mxu0 }
 0x2dd   :  { %1018 = vst.msk [vmem:[%s2136_s9 + $0x98] sm:$0xff] %vm66_vm1, %v993_v34  ;;  %v962_v37 = vmax.f32 %v912_v35, %v1945_v62 }
 0x2de   :  { %v916_v38 = vpop.f32.mrb[68].mxu0 }
 0x2df   :  { %v994_v39 = vmin.f32 %v962_v37, %v1951_v3  ;;  %v917_v40 = vadd.f32 %v1940_v60, %v916_v38  ;;  %v1428_v41 = vpop.f32.mrb[69].mxu0 }
 0x2e1   :  { %1019 = vst.msk [vmem:[%s2136_s9 + $0xa0] sm:$0xff] %vm66_vm1, %v994_v39  ;;  %v963_v43 = vmax.f32 %v917_v40, %v1945_v62 }
 0x2e2   :  { %v921_v45 = vpop.f32.mrb[70].mxu0 }
 0x2e3   :  { %v995_v46 = vmin.f32 %v963_v43, %v1951_v3  ;;  %v922_v47 = vadd.f32 %v1940_v60, %v921_v45  ;;  %v1431_v48 = vpop.f32.mrb[71].mxu0 }
 0x2e5   :  { %1020 = vst.msk [vmem:[%s2136_s9 + $0xa8] sm:$0xff] %vm66_vm1, %v995_v46  ;;  %v964_v49 = vmax.f32 %v922_v47, %v1945_v62 }
 0x2e6   :  { %v926_v51 = vpop.f32.mrb[72].mxu0 }
 0x2e7   :  { %v996_v52 = vmin.f32 %v964_v49, %v1951_v3  ;;  %v927_v53 = vadd.f32 %v1940_v60, %v926_v51  ;;  %v1434_v54 = vpop.f32.mrb[73].mxu0 }
 0x2e9   :  { %1021 = vst.msk [vmem:[%s2136_s9 + $0xb0] sm:$0xff] %vm66_vm1, %v996_v52  ;;  %v965_v55 = vmax.f32 %v927_v53, %v1945_v62 }
 0x2ea   :  { %v931_v57 = vpop.f32.mrb[74].mxu0 }
 0x2eb   :  { %v997_v58 = vmin.f32 %v965_v55, %v1951_v3  ;;  %v932_v59 = vadd.f32 %v1940_v60, %v931_v57  ;;  %v1437_v61 = vpop.f32.mrb[75].mxu0 }
 0x2ed   :  { %1022 = vst.msk [vmem:[%s2136_s9 + $0xb8] sm:$0xff] %vm66_vm1, %v997_v58  ;;  %v966_v17 = vmax.f32 %v932_v59, %v1945_v62 }
 0x2ef   :  { %v998_v63 = vmin.f32 %v966_v17, %v1951_v3 }
 0x2f1   :  { %1023 = vst.msk [vmem:[%s2136_s9 + $0xc0] sm:$0xff] %vm66_vm1, %v998_v63 }

</bundles_post_ra>
